<compile_context>
chip_gen: v5e
topology: v5e:2x2
jax: 0.10.0
libtpu: 0.0.40
codegen_flags: <defaults>
</compile_context>

<pallas_src>
import functools
import math

import jax
import jax.numpy as jnp
from jax.experimental import pallas as pl
from jax.experimental.pallas import tpu as pltpu


def _cdiv(a, b):
    return -(-a // b)


def _round_up(x, m):
    return ((x + m - 1) // m) * m


def _tile_sq_diff_partial(a_ref, b_ref):
    """Sum of (a - b)^2 over 8-row groups of the (R, L) tile -> (8, L) f32."""
    r, _ = a_ref.shape
    acc = None
    for j in range(r // 8):
        sl = pl.ds(8 * j, 8)
        d = a_ref[sl, :].astype(jnp.float32) - b_ref[sl, :].astype(jnp.float32)
        p = d * d
        acc = p if acc is None else acc + p
    return acc


def _tile_bce_partial(phat_ref, tgt_ref):
    """Sum of BCE terms over 8-row groups of the (R, L) tile -> (8, L) f32."""
    r, _ = phat_ref.shape
    acc = None
    for j in range(r // 8):
        sl = pl.ds(8 * j, 8)
        p = phat_ref[sl, :].astype(jnp.float32)
        t = tgt_ref[sl, :].astype(jnp.float32)
        # PyTorch clamps each log term at -100 (also makes 0-padding contribute 0).
        log_p = jnp.maximum(jnp.log(p), -100.0)
        log_1mp = jnp.maximum(jnp.log1p(-p), -100.0)
        term = -(t * log_p + (1.0 - t) * log_1mp)
        acc = term if acc is None else acc + term
    return acc


def _srnet_loss_kernel(mhat_ref, m_ref, shat_ref, s_ref, dhat_ref, d_ref,
                       out_ref, acc_d, acc_s, acc_m,
                       *, inv_nd, inv_ns, inv_nm):
    i = pl.program_id(1)           # inner (reduction) axis

    @pl.when(i == 0)
    def _init():
        acc_d[...] = jnp.zeros_like(acc_d)
        acc_s[...] = jnp.zeros_like(acc_s)
        acc_m[...] = jnp.zeros_like(acc_m)

    # Pure VPU adds into (8, lane) partial-sum accumulators.
    acc_d[...] += _tile_sq_diff_partial(dhat_ref, d_ref)
    acc_s[...] += _tile_sq_diff_partial(shat_ref, s_ref)
    acc_m[...] += _tile_bce_partial(mhat_ref, m_ref)

    @pl.when(i == pl.num_programs(1) - 1)
    def _finalize():
        # Lane-dense scaled partial per core; final cross-lane reduce is done
        # once in the wrapper.
        out_ref[...] = (acc_d[...] * inv_nd
                        + acc_s[...] * inv_ns
                        + acc_m[...] * inv_nm)


def srnet_loss(M_hat, M, S_hat, S, D_hat, D,
               *, lane=512, max_tile_rows=256, num_cores=2):
    """Pallas implementation of SRNetLoss.forward. Returns a scalar f32."""
    assert D.shape == D_hat.shape == S.shape == S_hat.shape
    assert M.shape == M_hat.shape
    assert lane % 128 == 0 and max_tile_rows % 8 == 0

    n_img = math.prod(D.shape)   # elements in D / S (mean denominator)
    n_msk = math.prod(M.shape)   # elements in M     (mean denominator)

    # Rows of the lane-dense layout, split across cores, then tiled.
    r_img = _cdiv(n_img, lane)
    r_msk = _cdiv(n_msk, lane)
    r_img_per_core = _cdiv(r_img, num_cores)
    g = max(1, _cdiv(r_img_per_core, max_tile_rows))          # inner steps / core
    tr_img = _round_up(_cdiv(r_img_per_core, g), 8)
    tr_msk = _round_up(_cdiv(_cdiv(r_msk, num_cores), g), 8)

    rows_img = num_cores * g * tr_img
    rows_msk = num_cores * g * tr_msk

    def prep(x, rows):
        flat = jnp.ravel(x)
        pad = rows * lane - flat.shape[0]
        if pad:
            flat = jnp.pad(flat, (0, pad))    # zero-pad: contributes 0 to sums
        return flat.reshape(rows, lane)

    mh2, m2 = prep(M_hat, rows_msk), prep(M, rows_msk)
    sh2, s2 = prep(S_hat, rows_img), prep(S, rows_img)
    dh2, d2 = prep(D_hat, rows_img), prep(D, rows_img)

    img_spec = pl.BlockSpec((tr_img, lane), lambda c, i: (c * g + i, 0))
    msk_spec = pl.BlockSpec((tr_msk, lane), lambda c, i: (c * g + i, 0))

    kernel = functools.partial(
        _srnet_loss_kernel,
        inv_nd=1.0 / n_img,
        inv_ns=1.0 / n_img,
        inv_nm=1.0 / n_msk,
    )

    partials = pl.pallas_call(
        kernel,
        out_shape=jax.ShapeDtypeStruct((num_cores * 8, lane), jnp.float32),
        grid_spec=pltpu.PrefetchScalarGridSpec(
            num_scalar_prefetch=0,
            grid=(num_cores, g),
            in_specs=[msk_spec, msk_spec, img_spec, img_spec, img_spec, img_spec],
            out_specs=pl.BlockSpec((8, lane), lambda c, i: (c, 0)),
            scratch_shapes=[pltpu.VMEM((8, lane), jnp.float32) for _ in range(3)],
        ),
        compiler_params=pltpu.CompilerParams(
            # Accumulators are carried only across the inner axis, so the
            # leading core-split axis is safely "parallel" (2 TCs on v7x).
            dimension_semantics=("parallel", "arbitrary"),
            # Explicit, conservative VMEM budget (double-buffered blocks stay
            # well under this on v5e/v6e/v7x with the default tile sizes).
            vmem_limit_bytes=32 * 1024 * 1024,
        ),
    )(mh2, m2, sh2, s2, dh2, d2)

    return jnp.sum(partials)


def srnet_loss_ref(M_hat, M, S_hat, S, D_hat, D):
    """Pure-JAX reference for validation."""
    mse_d = jnp.mean((D_hat - D) ** 2)
    mse_s = jnp.mean((S_hat - S) ** 2)
    log_p = jnp.maximum(jnp.log(M_hat), -100.0)
    log_1mp = jnp.maximum(jnp.log1p(-M_hat), -100.0)
    bce = jnp.mean(-(M * log_p + (1.0 - M) * log_1mp))
    return mse_d + mse_s + bce


def _make_inputs(key, B, C, H, W):
    k1, k2, k3, k4, k5, k6 = jax.random.split(key, 6)
    D_hat = jax.random.normal(k1, (B, C, H, W), dtype=jnp.float32)
    D = jax.random.normal(k2, (B, C, H, W), dtype=jnp.float32)
    S_hat = jax.random.normal(k3, (B, C, H, W), dtype=jnp.float32)
    S = jax.random.normal(k4, (B, C, H, W), dtype=jnp.float32)
    M_hat = jax.nn.sigmoid(jax.random.normal(k5, (B, 1, H, W), dtype=jnp.float32))
    M = jax.random.uniform(k6, (B, 1, H, W), dtype=jnp.float32)
    return M_hat, M, S_hat, S, D_hat, D


if __name__ == "__main__":
    key = jax.random.PRNGKey(0)
    key_a, key_b = jax.random.split(key, 2)

    # Test 1: small shapes (single inner step per core).
    args_a = _make_inputs(key_a, 2, 3, 16, 16)
    loss = jax.block_until_ready(srnet_loss(*args_a))
    loss_ref = jax.block_until_ready(srnet_loss_ref(*args_a))
    assert jnp.allclose(loss, loss_ref, rtol=1e-4, atol=1e-4), (loss, loss_ref)

    # Test 2: larger spatial size with a small tile to exercise the
    # multi-step accumulation path across the inner grid axis.
    args_b = _make_inputs(key_b, 2, 3, 64, 64)
    loss2 = jax.block_until_ready(srnet_loss(*args_b, max_tile_rows=16))
    loss2_ref = jax.block_until_ready(srnet_loss_ref(*args_b))
    assert jnp.allclose(loss2, loss2_ref, rtol=1e-4, atol=1e-4), (loss2, loss2_ref)

    print("KERNEL_OK")
</pallas_src>

<mosaic_0001>
module attributes {stable_mosaic.version = 11 : i64} {
  func.func @_srnet_loss_kernel(%arg0: i32, %arg1: i32, %arg2: memref<8x512xf32, #tpu.memory_space<vmem>>, %arg3: memref<8x512xf32, #tpu.memory_space<vmem>>, %arg4: memref<8x512xf32, #tpu.memory_space<vmem>>, %arg5: memref<8x512xf32, #tpu.memory_space<vmem>>, %arg6: memref<8x512xf32, #tpu.memory_space<vmem>>, %arg7: memref<8x512xf32, #tpu.memory_space<vmem>>, %arg8: memref<8x512xf32, #tpu.memory_space<vmem>>, %arg9: memref<8x512xf32, #tpu.memory_space<vmem>>, %arg10: memref<8x512xf32, #tpu.memory_space<vmem>>, %arg11: memref<8x512xf32, #tpu.memory_space<vmem>>) attributes {dimension_semantics = [#tpu.dimension_semantics<parallel>, #tpu.dimension_semantics<arbitrary>], iteration_bounds = array<i64: 2, 1>, scalar_prefetch = 0 : i64, scratch_operands = 3 : i64, tpu.core_type = #tpu.core_type<tc>, window_params = [{transform_indices = @transform_0, window_bounds = array<i64: 8, 512>}, {transform_indices = @transform_1, window_bounds = array<i64: 8, 512>}, {transform_indices = @transform_2, window_bounds = array<i64: 8, 512>}, {transform_indices = @transform_3, window_bounds = array<i64: 8, 512>}, {transform_indices = @transform_4, window_bounds = array<i64: 8, 512>}, {transform_indices = @transform_5, window_bounds = array<i64: 8, 512>}, {transform_indices = @transform_6, window_bounds = array<i64: 8, 512>}]} {
    %c0_i32 = arith.constant 0 : i32
    %0 = arith.cmpi eq, %arg1, %c0_i32 : i32
    %1 = arith.extui %0 : i1 to i32
    %c0_i32_0 = arith.constant 0 : i32
    %2 = arith.cmpi ne, %1, %c0_i32_0 : i32
    scf.if %2 {
      %cst_30 = arith.constant 0.000000e+00 : f32
      %40 = vector.broadcast %cst_30 : f32 to vector<8x512xf32>
      %c0_31 = arith.constant 0 : index
      %c0_32 = arith.constant 0 : index
      %41 = vector.load %arg9[%c0_31, %c0_32] : memref<8x512xf32, #tpu.memory_space<vmem>>, vector<8x512xf32>
      tpu.vector_store %arg9[%c0_31, %c0_32], %40 {strides = array<i32>} : memref<8x512xf32, #tpu.memory_space<vmem>>, vector<8x512xf32>,
      %cst_33 = arith.constant 0.000000e+00 : f32
      %42 = vector.broadcast %cst_33 : f32 to vector<8x512xf32>
      %c0_34 = arith.constant 0 : index
      %c0_35 = arith.constant 0 : index
      %43 = vector.load %arg10[%c0_34, %c0_35] : memref<8x512xf32, #tpu.memory_space<vmem>>, vector<8x512xf32>
      tpu.vector_store %arg10[%c0_34, %c0_35], %42 {strides = array<i32>} : memref<8x512xf32, #tpu.memory_space<vmem>>, vector<8x512xf32>,
      %cst_36 = arith.constant 0.000000e+00 : f32
      %44 = vector.broadcast %cst_36 : f32 to vector<8x512xf32>
      %c0_37 = arith.constant 0 : index
      %c0_38 = arith.constant 0 : index
      %45 = vector.load %arg11[%c0_37, %c0_38] : memref<8x512xf32, #tpu.memory_space<vmem>>, vector<8x512xf32>
      tpu.vector_store %arg11[%c0_37, %c0_38], %44 {strides = array<i32>} : memref<8x512xf32, #tpu.memory_space<vmem>>, vector<8x512xf32>,
    } else {
    }
    %c0 = arith.constant 0 : index
    %c0_1 = arith.constant 0 : index
    %3 = vector.load %arg9[%c0, %c0_1] : memref<8x512xf32, #tpu.memory_space<vmem>>, vector<8x512xf32>
    %c0_2 = arith.constant 0 : index
    %c0_3 = arith.constant 0 : index
    %4 = vector.load %arg6[%c0_2, %c0_3] : memref<8x512xf32, #tpu.memory_space<vmem>>, vector<8x512xf32>
    %c0_4 = arith.constant 0 : index
    %c0_5 = arith.constant 0 : index
    %5 = vector.load %arg7[%c0_4, %c0_5] : memref<8x512xf32, #tpu.memory_space<vmem>>, vector<8x512xf32>
    %6 = arith.subf %4, %5 : vector<8x512xf32>
    %7 = arith.mulf %6, %6 : vector<8x512xf32>
    %8 = arith.addf %3, %7 : vector<8x512xf32>
    %c0_6 = arith.constant 0 : index
    %c0_7 = arith.constant 0 : index
    %9 = vector.load %arg9[%c0_6, %c0_7] : memref<8x512xf32, #tpu.memory_space<vmem>>, vector<8x512xf32>
    tpu.vector_store %arg9[%c0_6, %c0_7], %8 {strides = array<i32>} : memref<8x512xf32, #tpu.memory_space<vmem>>, vector<8x512xf32>,
    %c0_8 = arith.constant 0 : index
    %c0_9 = arith.constant 0 : index
    %10 = vector.load %arg10[%c0_8, %c0_9] : memref<8x512xf32, #tpu.memory_space<vmem>>, vector<8x512xf32>
    %c0_10 = arith.constant 0 : index
    %c0_11 = arith.constant 0 : index
    %11 = vector.load %arg4[%c0_10, %c0_11] : memref<8x512xf32, #tpu.memory_space<vmem>>, vector<8x512xf32>
    %c0_12 = arith.constant 0 : index
    %c0_13 = arith.constant 0 : index
    %12 = vector.load %arg5[%c0_12, %c0_13] : memref<8x512xf32, #tpu.memory_space<vmem>>, vector<8x512xf32>
    %13 = arith.subf %11, %12 : vector<8x512xf32>
    %14 = arith.mulf %13, %13 : vector<8x512xf32>
    %15 = arith.addf %10, %14 : vector<8x512xf32>
    %c0_14 = arith.constant 0 : index
    %c0_15 = arith.constant 0 : index
    %16 = vector.load %arg10[%c0_14, %c0_15] : memref<8x512xf32, #tpu.memory_space<vmem>>, vector<8x512xf32>
    tpu.vector_store %arg10[%c0_14, %c0_15], %15 {strides = array<i32>} : memref<8x512xf32, #tpu.memory_space<vmem>>, vector<8x512xf32>,
    %c0_16 = arith.constant 0 : index
    %c0_17 = arith.constant 0 : index
    %17 = vector.load %arg11[%c0_16, %c0_17] : memref<8x512xf32, #tpu.memory_space<vmem>>, vector<8x512xf32>
    %c0_18 = arith.constant 0 : index
    %c0_19 = arith.constant 0 : index
    %18 = vector.load %arg2[%c0_18, %c0_19] : memref<8x512xf32, #tpu.memory_space<vmem>>, vector<8x512xf32>
    %c0_20 = arith.constant 0 : index
    %c0_21 = arith.constant 0 : index
    %19 = vector.load %arg3[%c0_20, %c0_21] : memref<8x512xf32, #tpu.memory_space<vmem>>, vector<8x512xf32>
    %20 = math.log %18 : vector<8x512xf32>
    %cst = arith.constant -1.000000e+02 : f32
    %21 = vector.broadcast %cst : f32 to vector<8x512xf32>
    %22 = arith.maximumf %20, %21 : vector<8x512xf32>
    %cst_22 = arith.constant 0.000000e+00 : f32
    %23 = vector.broadcast %cst_22 : f32 to vector<8x512xf32>
    %24 = arith.subf %23, %18 : vector<8x512xf32>
    %25 = math.log1p %24 : vector<8x512xf32>
    %cst_23 = arith.constant -1.000000e+02 : f32
    %26 = vector.broadcast %cst_23 : f32 to vector<8x512xf32>
    %27 = arith.maximumf %25, %26 : vector<8x512xf32>
    %28 = arith.mulf %19, %22 : vector<8x512xf32>
    %cst_24 = arith.constant 1.000000e+00 : f32
    %29 = vector.broadcast %cst_24 : f32 to vector<8x512xf32>
    %30 = arith.subf %29, %19 : vector<8x512xf32>
    %31 = arith.mulf %30, %27 : vector<8x512xf32>
    %32 = arith.addf %28, %31 : vector<8x512xf32>
    %cst_25 = arith.constant 0.000000e+00 : f32
    %33 = vector.broadcast %cst_25 : f32 to vector<8x512xf32>
    %34 = arith.subf %33, %32 : vector<8x512xf32>
    %35 = arith.addf %17, %34 : vector<8x512xf32>
    %c0_26 = arith.constant 0 : index
    %c0_27 = arith.constant 0 : index
    %36 = vector.load %arg11[%c0_26, %c0_27] : memref<8x512xf32, #tpu.memory_space<vmem>>, vector<8x512xf32>
    tpu.vector_store %arg11[%c0_26, %c0_27], %35 {strides = array<i32>} : memref<8x512xf32, #tpu.memory_space<vmem>>, vector<8x512xf32>,
    %c0_i32_28 = arith.constant 0 : i32
    %37 = arith.cmpi eq, %arg1, %c0_i32_28 : i32
    %38 = arith.extui %37 : i1 to i32
    %c0_i32_29 = arith.constant 0 : i32
    %39 = arith.cmpi ne, %38, %c0_i32_29 : i32
    scf.if %39 {
      %c0_30 = arith.constant 0 : index
      %c0_31 = arith.constant 0 : index
      %40 = vector.load %arg9[%c0_30, %c0_31] : memref<8x512xf32, #tpu.memory_space<vmem>>, vector<8x512xf32>
      %cst_32 = arith.constant 6.51041686E-4 : f32
      %41 = vector.broadcast %cst_32 : f32 to vector<8x512xf32>
      %42 = arith.mulf %40, %41 : vector<8x512xf32>
      %c0_33 = arith.constant 0 : index
      %c0_34 = arith.constant 0 : index
      %43 = vector.load %arg10[%c0_33, %c0_34] : memref<8x512xf32, #tpu.memory_space<vmem>>, vector<8x512xf32>
      %cst_35 = arith.constant 6.51041686E-4 : f32
      %44 = vector.broadcast %cst_35 : f32 to vector<8x512xf32>
      %45 = arith.mulf %43, %44 : vector<8x512xf32>
      %46 = arith.addf %42, %45 : vector<8x512xf32>
      %c0_36 = arith.constant 0 : index
      %c0_37 = arith.constant 0 : index
      %47 = vector.load %arg11[%c0_36, %c0_37] : memref<8x512xf32, #tpu.memory_space<vmem>>, vector<8x512xf32>
      %cst_38 = arith.constant 0.001953125 : f32
      %48 = vector.broadcast %cst_38 : f32 to vector<8x512xf32>
      %49 = arith.mulf %47, %48 : vector<8x512xf32>
      %50 = arith.addf %46, %49 : vector<8x512xf32>
      %c0_39 = arith.constant 0 : index
      %c0_40 = arith.constant 0 : index
      %51 = vector.load %arg8[%c0_39, %c0_40] : memref<8x512xf32, #tpu.memory_space<vmem>>, vector<8x512xf32>
      tpu.vector_store %arg8[%c0_39, %c0_40], %50 {strides = array<i32>} : memref<8x512xf32, #tpu.memory_space<vmem>>, vector<8x512xf32>,
    } else {
    }
    return
  }
  func.func @transform_0(%arg0: i32, %arg1: i32) -> (i32, i32) {
    %c1_i32 = arith.constant 1 : i32
    %0 = arith.muli %arg0, %c1_i32 : i32
    %1 = arith.addi %0, %arg1 : i32
    %c0_i32 = arith.constant 0 : i32
    %c0_i32_0 = arith.constant 0 : i32
    return %1, %c0_i32 : i32, i32
  }
  func.func @transform_1(%arg0: i32, %arg1: i32) -> (i32, i32) {
    %c1_i32 = arith.constant 1 : i32
    %0 = arith.muli %arg0, %c1_i32 : i32
    %1 = arith.addi %0, %arg1 : i32
    %c0_i32 = arith.constant 0 : i32
    %c0_i32_0 = arith.constant 0 : i32
    return %1, %c0_i32 : i32, i32
  }
  func.func @transform_2(%arg0: i32, %arg1: i32) -> (i32, i32) {
    %c1_i32 = arith.constant 1 : i32
    %0 = arith.muli %arg0, %c1_i32 : i32
    %1 = arith.addi %0, %arg1 : i32
    %c0_i32 = arith.constant 0 : i32
    %c0_i32_0 = arith.constant 0 : i32
    return %1, %c0_i32 : i32, i32
  }
  func.func @transform_3(%arg0: i32, %arg1: i32) -> (i32, i32) {
    %c1_i32 = arith.constant 1 : i32
    %0 = arith.muli %arg0, %c1_i32 : i32
    %1 = arith.addi %0, %arg1 : i32
    %c0_i32 = arith.constant 0 : i32
    %c0_i32_0 = arith.constant 0 : i32
    return %1, %c0_i32 : i32, i32
  }
  func.func @transform_4(%arg0: i32, %arg1: i32) -> (i32, i32) {
    %c1_i32 = arith.constant 1 : i32
    %0 = arith.muli %arg0, %c1_i32 : i32
    %1 = arith.addi %0, %arg1 : i32
    %c0_i32 = arith.constant 0 : i32
    %c0_i32_0 = arith.constant 0 : i32
    return %1, %c0_i32 : i32, i32
  }
  func.func @transform_5(%arg0: i32, %arg1: i32) -> (i32, i32) {
    %c1_i32 = arith.constant 1 : i32
    %0 = arith.muli %arg0, %c1_i32 : i32
    %1 = arith.addi %0, %arg1 : i32
    %c0_i32 = arith.constant 0 : i32
    %c0_i32_0 = arith.constant 0 : i32
    return %1, %c0_i32 : i32, i32
  }
  func.func @transform_6(%arg0: i32, %arg1: i32) -> (i32, i32) {
    %c0_i32 = arith.constant 0 : i32
    %c0_i32_0 = arith.constant 0 : i32
    return %arg0, %c0_i32 : i32, i32
  }
}

</mosaic_0001>

<bundles_post_ra>
// kernel: tpu_custom_call.1
= control target key start
LH: loop header
LB: loop body
LE: loop exit
PB: predicated region body
PF: predicated region fallthrough
CT: control target
= control target key end

     0   :  { %s1640_s0 = inlined_call_operand.hbm [shape: f32[16,512], index: 0, kind: input, shape index: {}]   ;;  %s1641_s1 = inlined_call_operand.hbm [shape: f32[16,512], index: 1, kind: input, shape index: {}]   ;;  %s1642_s2 = inlined_call_operand.hbm [shape: f32[16,512], index: 2, kind: input, shape index: {}]   ;;  %s1643_s3 = inlined_call_operand.hbm [shape: f32[16,512], index: 3, kind: input, shape index: {}]   ;;  %s1644_s4 = inlined_call_operand.hbm [shape: f32[16,512], index: 4, kind: input, shape index: {}]   ;;  %s1645_s5 = inlined_call_operand.hbm [shape: f32[16,512], index: 5, kind: input, shape index: {}]   ;;  %s1646_s6 = inlined_call_operand.hbm [shape: f32[16,512], index: 6, kind: output, shape index: {}]  }
   0x1   :  { %1652 = sst [smem:[#allocation27_spill]] %s1640_s0 }
   0x2   :  { %1653 = sst [smem:[#allocation28_spill]] %s1641_s1 }
   0x3   :  { %1654 = sst [smem:[#allocation29_spill]] %s1642_s2 }
   0x4   :  { %1655 = sst [smem:[#allocation30_spill]] %s1643_s3 }
   0x5   :  { %11 = vsyncpa [#allocation6], 0 }
   0x6   :  { %13 = vsyncpa [#allocation6 + $0x1], 0 }
   0x7   :  { %14 = vsyncpa [#allocation9], 0 }
   0x8   :  { %16 = vsyncpa [#allocation9 + $0x1], 0 }
   0x9   :  { %17 = vsyncpa [#allocation12], 0 }
   0xa   :  { %19 = vsyncpa [#allocation12 + $0x1], 0 }
   0xb   :  { %20 = vsyncpa [#allocation15], 0 }
   0xc   :  { %22 = vsyncpa [#allocation15 + $0x1], 0 }
   0xd   :  { %23 = vsyncpa [#allocation7], 0 }
   0xe   :  { %25 = vsyncpa [#allocation7 + $0x1], 0  ;;  %s1373_s21 = smov 0   ;;  %s1375_s22 = smov 0  }
   0xf   :  { %s1377_s23 = smov 0   ;;  %s1379_s24 = smov 0  }
  0x10   :  { %s1381_s25 = smov 0   ;;  %s1383_s26 = smov 0  }
  0x11 LB: > { %1656 = sst [smem:[#allocation22_spill]] %s1324_s23  ;;  %s1404_s27 = sadd.s32 4294967295, %s1336_s26   ;;  %s1336_s26 = sphi %s1383_s26, %s31_s26   ;;  %s1332_s25 = sphi %s1381_s25, %s1681_s25   ;;  %s1328_s24 = sphi %s1379_s24, %s1680_s24   ;;  %s1324_s23 = sphi %s1377_s23, %s1679_s23   ;;  %s1320_s22 = sphi %s1375_s22, %s1683_s22   ;;  %s1316_s21 = sphi %s1373_s21, %s1682_s21  }
  0x12   : > { %1657 = sst [smem:[#allocation23_spill]] %s1332_s25  ;;  %s918_s28 = sadd.s32 4294967294, %s1336_s26  }
  0x13   : > { %1658 = sst [smem:[#allocation24_spill]] %s1336_s26  ;;  %s43_s29 = sadd.s32 1, %s1332_s25 }
  0x14   : > { %s52_s30 = sadd.s32 1, %s1324_s23  ;;  %p45_p0 = scmp.ge.s32.totalorder %s43_s29, 2 }
  0x15   : > { %p59_p1 = scmp.ne.s32.totalorder %s1324_s23, %s1320_s22  ;;  %p60_p2 = scmp.eq.s32.totalorder %s1336_s26, 0 }
  0x16   : > { %p65_p3 = scmp.ne.s32.totalorder %s1320_s22, %s1316_s21  ;;  %s1685_s29 = smov (%p45_p0, %s43_s29), 0 }
  0x17   : > { %1659 = sst [smem:[#allocation25_spill]] %s1685_s29  ;;  %p1416_p4 = por %p60_p2, %p59_p1 }
  0x18   : > { %p66_p5 = scmp.eq.s32.totalorder %s1404_s27, 0  ;;  %s49_s8 = ssub.s32 %s1332_s25, %s1685_s29 }
  0x19   : > { %p229_p6 = scmp.eq.s32.totalorder %s1404_s27, 1  ;;  %p50_p7 = scmp.eq.s32.totalorder %s49_s8, 0 }
  0x1a   : > { %p1424_p8 = por %p66_p5, %p65_p3  ;;  %p235_p10 = scmp.eq.s32.totalorder %s918_s28, 1 }
  0x1b   : > { %p1428_p9 = por %p229_p6, %p59_p1  ;;  %p920_p12 = scmp.ge.s32.totalorder %s1336_s26, 2 }
  0x1c   : > { %s1433_s11 = scalar_select %p50_p7, %s1324_s23, %s52_s30  }
  0x1d   : > { %p1435_p11 = por %p235_p10, %p65_p3  ;;  %p996_p13 = scmp.lt.s32.totalorder %s1336_s26, 2 }
  0x1e   : > { %1663 = sst [smem:[#allocation26_spill]] %s1433_s11  ;;  %s1442_s13 = sand.u32 1, %s1324_s23  }
  0x1f   : > { %s1445_s14 = sshll.u32 %s1442_s13, 5  ;;  %s1448_s15 = sshll.u32 %s1332_s25, 5 }
  0x20   : > { %p1452_p0 = pnand %p996_p13, %p1416_p4  ;;  %s276_s17 = sand.u32 1, %s1336_s26  }
  0x21   : > { %s1666_s1 = sld [smem:[#allocation28_spill]]  ;;  %s280_s30 = scalar_lea.vmem [#allocation8], %s1445_s14 }
  0x22   : > { %s290_s8 = sshll.u32 %s280_s30, 4  ;;  %s277_s7 = scalar_lea.sflag [#allocation9], %s276_s17  ;;  %s291_s8 = int_to_ptr.vmem [resolvable:$true] %s290_s8 }
  0x23   : > { %p939_p1 = scmp.ge.s32.totalorder %s1336_s26, 1  ;;  %p379_p2 = scmp.lt.s32.totalorder %s1336_s26, 3 }
  0x24   : > { %s1668_s3 = sld [smem:[#allocation30_spill]]  ;;  %s259_s18 = scalar_lea.vmem [#allocation5], %s1445_s14 }
  0x25   : > { %p1466_p3 = pnand %p939_p1, %p379_p2  ;;  %s1669_s0 = sld [smem:[#allocation27_spill]] }
  0x26   : > { %s269_s19 = sshll.u32 %s259_s18, 4  ;;  %s1670_s2 = sld [smem:[#allocation29_spill]]  ;;  %s270_s19 = int_to_ptr.vmem [resolvable:$true] %s269_s19 }
  0x27   : > { %s286_s20 = scalar_lea.hbm %s1666_s1, %s1448_s15  ;;  %s322_s1 = scalar_lea.vmem [#allocation11], %s1445_s14 }
  0x28   : > { %s288_s28 = sshll.u32 %s286_s20, 4  ;;  %s332_s25 = sshll.u32 %s322_s1, 4  ;;  %s289_s28 = int_to_ptr.hbm [resolvable:$true] %s288_s28  ;;  %s333_s25 = int_to_ptr.vmem [resolvable:$true] %s332_s25 }
  0x29   : > { %979 = dma.hbm_to_vmem [thread:$0]  (!%p1452_p0), %s289_s28, 512, %s291_s8, %s277_s7  }
  0x2a   : > { %s328_s20 = scalar_lea.hbm %s1668_s3, %s1448_s15  ;;  %s319_s28 = scalar_lea.sflag [#allocation12], %s276_s17 }
  0x2b   : > { %s330_s30 = sshll.u32 %s328_s20, 4  ;;  %s265_s23 = scalar_lea.hbm %s1669_s0, %s1448_s15  ;;  %s331_s30 = int_to_ptr.hbm [resolvable:$true] %s330_s30 }
  0x2c   : > { %985 = dma.hbm_to_vmem [thread:$0]  (!%p1452_p0), %s331_s30, 512, %s333_s25, %s319_s28  }
  0x2d   : > { %s267_s3 = sshll.u32 %s265_s23, 4  ;;  %s256_s20 = scalar_lea.sflag [#allocation6], %s1442_s13  ;;  %s268_s3 = int_to_ptr.hbm [resolvable:$true] %s267_s3 }
  0x2e   : > { %976 = dma.hbm_to_vmem [thread:$0]  (!%p1452_p0), %s268_s3, 512, %s270_s19, %s256_s20  }
  0x2f   : > { %s307_s25 = scalar_lea.hbm %s1670_s2, %s1448_s15  ;;  %s301_s30 = scalar_lea.vmem [#allocation10], %s1445_s14 }
  0x30   : > { %s311_s11 = sshll.u32 %s301_s30, 4  ;;  %s309_s8 = sshll.u32 %s307_s25, 4  ;;  %s312_s11 = int_to_ptr.vmem [resolvable:$true] %s311_s11  ;;  %s310_s8 = int_to_ptr.hbm [resolvable:$true] %s309_s8 }
  0x31   : > { %982 = dma.hbm_to_vmem [thread:$0]  (!%p1452_p0), %s310_s8, 512, %s312_s11, %s277_s7  }
  0x32   : > { %s349_s0 = scalar_lea.hbm %s1644_s4, %s1448_s15  ;;  %s343_s26 = scalar_lea.vmem [#allocation13], %s1445_s14 }
  0x33   : > { %s353_s3 = sshll.u32 %s343_s26, 4  ;;  %s351_s19 = sshll.u32 %s349_s0, 4  ;;  %s354_s3 = int_to_ptr.vmem [resolvable:$true] %s353_s3  ;;  %s352_s19 = int_to_ptr.hbm [resolvable:$true] %s351_s19 }
  0x34   : > { %988 = dma.hbm_to_vmem [thread:$0]  (!%p1452_p0), %s352_s19, 512, %s354_s3, %s319_s28  }
  0x35   : > { %s370_s17 = scalar_lea.hbm %s1645_s5, %s1448_s15  ;;  %s364_s30 = scalar_lea.vmem [#allocation14], %s1445_s14 }
  0x36   : > { %s372_s25 = sshll.u32 %s370_s17, 4  ;;  %s374_s2 = sshll.u32 %s364_s30, 4  ;;  %s373_s25 = int_to_ptr.hbm [resolvable:$true] %s372_s25  ;;  %s375_s2 = int_to_ptr.vmem [resolvable:$true] %s374_s2 }
  0x37   : > { %s361_s7 = scalar_lea.sflag [#allocation15], %s1442_s13  ;;  %383 = sbr.rel (%p1466_p3) target bundleno = 113 (0x71), region = 44 }
  0x38   : > { %991 = dma.hbm_to_vmem [thread:$0]  (!%p1452_p0), %s373_s25, 512, %s375_s2, %s361_s7  }
  0x39   : > { %s1510_s0 = sand.u32 (!%p1466_p3), 1, %s1320_s22  }
  0x3a   : > { %s1513_s26 = sshll.u32 (!%p1466_p3), %s1510_s0, 5  ;;  %s386_s15 = scalar_lea.sflag (!%p1466_p3), [#allocation6], %s1510_s0 }
  0x3b   : > { %s1517_s14 = scalar_lea.vmem (!%p1466_p3), [#allocation5], %s1513_s26 }
  0x3c   : > { %1295 = dma.done.wait (%p1424_p8), %s386_s15, 512  }
  0x3d   : > { %1297 = vsyncadd (%p1424_p8), %s386_s15, 4294966784  ;;  %s395_s2 = sand.u32 1, %s1404_s27   ;;  %s1525_s13 = scalar_lea.vmem [#allocation8], %s1513_s26 }
  0x3e   : > { %s396_s29 = scalar_lea.sflag [#allocation9], %s395_s2 }
  0x3f   : > { %1299 = dma.done.wait (%p1424_p8), %s396_s29, 1024  }
  0x40   : > { %1301 = vsyncadd (%p1424_p8), %s396_s29, 4294966272  ;;  %s1532_s16 = scalar_lea.vmem [#allocation10], %s1513_s26  ;;  %s416_s28 = scalar_lea.sflag [#allocation12], %s395_s2 }
  0x41   : > { %s1535_s11 = scalar_lea.vmem [#allocation11], %s1513_s26 }
  0x42   : > { %1303 = dma.done.wait (%p1424_p8), %s416_s28, 1024  }
  0x43   : > { %1305 = vsyncadd (%p1424_p8), %s416_s28, 4294966272  ;;  %s1542_s27 = scalar_lea.vmem [#allocation13], %s1513_s26  ;;  %s436_s8 = scalar_lea.sflag [#allocation15], %s1510_s0 }
  0x44   : > { %s1546_s23 = scalar_lea.vmem [#allocation14], %s1513_s26 }
  0x45   : > { %1307 = dma.done.wait (%p1424_p8), %s436_s8, 512  }
  0x46   : > { %1309 = vsyncadd (%p1424_p8), %s436_s8, 4294966784  ;;  %v576_v0 = vld [vmem:[%s1517_s14] sm:$0xff]  ;;  %v577_v8 = vld [vmem:[%s1517_s14 + $0x8] sm:$0xff]  ;;  %s1594_s9 = scalar_lea.vmem [#allocation16], %s1513_s26  ;;  %s958_s18 = sshll.u32 %s1328_s24, 5 }
  0x47   : > { %v520_v1 = vld [vmem:[%s1542_s27] sm:$0xff]  ;;  %1046 = vlog2.f32 %v576_v0  ;;  %v596_v2 = vsub.f32 0.0, %v576_v0  ;;  %v521_v11 = vld [vmem:[%s1542_s27 + $0x8] sm:$0xff]  ;;  %v597_v14 = vsub.f32 0.0, %v577_v8  ;;  %v578_v23 = vld [vmem:[%s1517_s14 + $0x10] sm:$0xff]  ;;  %s719_s20 = scalar_lea.hbm %s1646_s6, %s958_s18  ;;  %s721_s1 = sshll.u32 %s1594_s9, 4  ;;  %s722_s1 = int_to_ptr.vmem [resolvable:$true] %s721_s1 }
  0x48   : > { %v524_v3 = vld [vmem:[%s1546_s23] sm:$0xff]  ;;  %1048 = vlog2.f32 %v577_v8  ;;  %v525_v12 = vld [vmem:[%s1546_s23 + $0x8] sm:$0xff]  ;;  %v598_v35 = vsub.f32 0.0, %v578_v23  ;;  %v522_v48 = vld [vmem:[%s1542_s27 + $0x10] sm:$0xff]  ;;  %s723_s17 = sshll.u32 %s719_s20, 4  ;;  %s708_s24 = scalar_lea.sflag [#allocation7], %s1510_s0  ;;  %s724_s17 = int_to_ptr.hbm [resolvable:$true] %s723_s17 }
  0x49   : > { %v548_v4 = vld [vmem:[%s1532_s16] sm:$0xff]  ;;  %v600_v6 = vadd.f32 1.0, %v596_v2  ;;  %v603_v7 = vmul.f32 -0.5, %v596_v2  ;;  %v528_v9 = vsub.f32 %v520_v1, %v524_v3  ;;  %v606_v16 = vand.u32 2147483647, %v596_v2  ;;  %v549_v17 = vld [vmem:[%s1532_s16 + $0x8] sm:$0xff] }
  0x4a   : > { %v552_v5 = vld [vmem:[%s1535_s11] sm:$0xff]  ;;  %v553_v18 = vld [vmem:[%s1535_s11 + $0x8] sm:$0xff]  ;;  %v529_v20 = vsub.f32 %v521_v11, %v525_v12  ;;  %v609_v21 = vadd.f32 1.0, %v597_v14  ;;  %v612_v22 = vmul.f32 -0.5, %v597_v14  ;;  %v615_v38 = vand.u32 2147483647, %v597_v14 }
  0x4b   : > { %v556_v10 = vsub.f32 %v548_v4, %v552_v5  ;;  %1050 = vlog2.f32 %v600_v6  ;;  %v604_v13 = vadd.f32 1.0, %v603_v7  ;;  %v532_v24 = vmul.f32 %v528_v9, %v528_v9  ;;  %v580_v27 = vld [vmem:[%s1525_s13] sm:$0xff]  ;;  %v581_v41 = vld [vmem:[%s1525_s13 + $0x8] sm:$0xff]  ;;  %v526_v49 = vld [vmem:[%s1546_s23 + $0x10] sm:$0xff]  ;;  %s1256_s25 = sshra.s32 %s724_s17, 4  ;;  %s1262_s15 = scalar_lea.hbm %s1646_s6, 64  ;;  %s1257_s25 = int_to_ptr.hbm [resolvable:$true] %s1256_s25 }
  0x4c   : > { %1052 = vlog2.f32 %v578_v23  ;;  %v557_v30 = vsub.f32 %v549_v17, %v553_v18  ;;  %vm1564_vm0 = vcmp.lt.f32.partialorder %v606_v16, 0.0004427343  ;;  %v613_v34 = vadd.f32 1.0, %v612_v22  ;;  %v550_v54 = vld [vmem:[%s1532_s16 + $0x10] sm:$0xff]  ;;  %v579_v56 = vld [vmem:[%s1517_s14 + $0x18] sm:$0xff]  ;;  %s1258_s30 = scalar_lea.hbm %s1257_s25, 32  ;;  %p1263_p7 = scmp.lt.s32.totalorder %s1257_s25, %s1646_s6 }
  0x4d   : > { %v1047_v15 = vpop.eup %1046  ;;  %v560_v25 = vmul.f32 %v556_v10, %v556_v10  ;;  %v605_v29 = vmul.f32 %v604_v13, %v596_v2  ;;  %1054 = vlog2.f32 %v609_v21  ;;  %v533_v37 = vmul.f32 %v529_v20, %v529_v20  ;;  %v554_v55 = vld [vmem:[%s1535_s11 + $0x10] sm:$0xff]  ;;  %v523_v22 = vld [vmem:[%s1542_s27 + $0x18] sm:$0xff]  ;;  %p1259_p4 = scmp.ne.s32.totalorder %s1257_s25, %s1258_s30  ;;  %p1264_p8 = scmp.lt.s32.totalorder %s1262_s15, %s1258_s30 }
  0x4e   : > { %v585_v19 = vmul.f32 0.6931472, %v1047_v15  ;;  %v1049_v26 = vpop.eup %1048  ;;  %v644_v39 = vsub.f32 1.0, %v580_v27  ;;  %v675_v40 = vmul.f32 0.0006510417, %v532_v24  ;;  %v618_v42 = vadd.f32 1.0, %v598_v35 }
  0x4f   : > { %v587_v33 = vmul.f32 0.6931472, %v1049_v26  ;;  %v621_v43 = vmul.f32 -0.5, %v598_v35  ;;  %v683_v46 = vmul.f32 0.0006510417, %v560_v25  ;;  %v561_v47 = vmul.f32 %v557_v30, %v557_v30  ;;  %v582_v10 = vld [vmem:[%s1525_s13 + $0x10] sm:$0xff]  ;;  %p1260_p5 = pnand %p1259_p4, %p1428_p9  ;;  %p1265_p10 = por %p1264_p8, %p1263_p7 }
  0x50   : > { %v592_v28 = vmax.f32 %v585_v19, -100.0  ;;  %v614_v53 = vmul.f32 %v613_v34, %v597_v14  ;;  %1056 = vlog2.f32 %v618_v42  ;;  %vm1576_vm1 = vcmp.lt.f32.partialorder %v615_v38, 0.0004427343  ;;  %v527_v26 = vld [vmem:[%s1546_s23 + $0x18] sm:$0xff] }
  0x51   : > { %v1051_v31 = vpop.eup %1050  ;;  %v593_v52 = vmax.f32 %v587_v33, -100.0  ;;  %v645_v59 = vsub.f32 1.0, %v581_v41  ;;  %v676_v60 = vmul.f32 0.0006510417, %v533_v37  ;;  %v622_v61 = vadd.f32 1.0, %v621_v43  ;;  %p1261_p6 = pneg %p1260_p5 }
  0x52   : > { %v602_v36 = vmul.f32 0.6931472, %v1051_v31  ;;  %v640_v45 = vmul.f32 %v592_v28, %v580_v27  ;;  %v1053_v50 = vpop.eup %1052  ;;  %v624_v1 = vand.u32 2147483647, %v598_v35  ;;  %v687_v2 = vadd.f32 %v683_v46, %v675_v40  ;;  %v551_v27 = vld [vmem:[%s1532_s16 + $0x18] sm:$0xff] }
  0x53   : > { %v1055_v57 = vpop.eup %1054  ;;  %v589_v0 = vmul.f32 0.6931472, %v1053_v50  ;;  %v530_v3 = vsub.f32 %v522_v48, %v526_v49  ;;  %1058 = vlog2.f32 %v579_v56  ;;  %v599_v4 = vsub.f32 0.0, %v579_v56  ;;  %v555_v28 = vld [vmem:[%s1535_s11 + $0x18] sm:$0xff]  ;;  %p1266_p13 = pnand %p1265_p10, %p1261_p6 }
  0x54   : > { %v608_v44 = vsel %vm1564_vm0, %v605_v29, %v602_v36  ;;  %v611_v63 = vmul.f32 0.6931472, %v1055_v57  ;;  %v641_v7 = vmul.f32 %v593_v52, %v581_v41  ;;  %v558_v8 = vsub.f32 %v550_v54, %v554_v55 }
  0x55   : > { %v636_v51 = vmax.f32 %v608_v44, -100.0  ;;  %v623_v11 = vmul.f32 %v622_v61, %v598_v35  ;;  %v627_v12 = vadd.f32 1.0, %v599_v4  ;;  %v630_v13 = vmul.f32 -0.5, %v599_v4 }
  0x56   : > { %v617_v6 = vsel %vm1576_vm1, %v614_v53, %v611_v63  ;;  %v1057_v14 = vpop.eup %1056  ;;  %v684_v16 = vmul.f32 0.0006510417, %v561_v47  ;;  %v594_v17 = vmax.f32 %v589_v0, -100.0  ;;  %vm1583_vm2 = vcmp.lt.f32.partialorder %v624_v1, 0.0004427343 }
  0x57   : > { %v648_v62 = vmul.f32 %v644_v39, %v636_v51  ;;  %v637_v9 = vmax.f32 %v617_v6, -100.0  ;;  %v534_v20 = vmul.f32 %v530_v3, %v530_v3  ;;  %v620_v21 = vmul.f32 0.6931472, %v1057_v14 }
  0x58   : > { %1060 = vlog2.f32 %v627_v12  ;;  %v562_v24 = vmul.f32 %v558_v8, %v558_v8  ;;  %v646_v25 = vsub.f32 1.0, %v582_v10  ;;  %v631_v29 = vadd.f32 1.0, %v630_v13 }
  0x59   : > { %v652_v5 = vadd.f32 %v648_v62, %v640_v45  ;;  %v649_v19 = vmul.f32 %v645_v59, %v637_v9  ;;  %v1059_v30 = vpop.eup %1058  ;;  %v626_v32 = vsel %vm1583_vm2, %v623_v11, %v620_v21  ;;  %v633_v33 = vand.u32 2147483647, %v599_v4  ;;  %v583_v45 = vld [vmem:[%s1525_s13 + $0x18] sm:$0xff] }
  0x5a   : > { %v638_v35 = vmax.f32 %v626_v32, -100.0  ;;  %v642_v36 = vmul.f32 %v594_v17, %v582_v10  ;;  %v591_v37 = vmul.f32 0.6931472, %v1059_v30  ;;  %v688_v39 = vadd.f32 %v684_v16, %v676_v60 }
  0x5b   : > { %v656_v15 = vsub.f32 0.0, %v652_v5  ;;  %v653_v31 = vadd.f32 %v649_v19, %v641_v7  ;;  %v531_v40 = vsub.f32 %v523_v22, %v527_v26  ;;  %v559_v41 = vsub.f32 %v551_v27, %v555_v28 }
  0x5c   : > { %v650_v42 = vmul.f32 %v646_v25, %v638_v35  ;;  %v677_v43 = vmul.f32 0.0006510417, %v534_v20  ;;  %v685_v44 = vmul.f32 0.0006510417, %v562_v24  ;;  %v632_v46 = vmul.f32 %v631_v29, %v599_v4 }
  0x5d   : > { %v695_v23 = vmul.f32 0.001953125, %v656_v15  ;;  %v657_v38 = vsub.f32 0.0, %v653_v31  ;;  %v595_v49 = vmax.f32 %v591_v37, -100.0  ;;  %vm634_vm3 = vcmp.lt.f32.partialorder %v633_v33, 0.0004427343 }
  0x5e   : > { %v1061_v47 = vpop.eup %1060  ;;  %v654_v50 = vadd.f32 %v650_v42, %v642_v36  ;;  %v535_v53 = vmul.f32 %v531_v40, %v531_v40  ;;  %v563_v54 = vmul.f32 %v559_v41, %v559_v41  ;;  %v647_v55 = vsub.f32 1.0, %v583_v45 }
  0x5f   : > { %v699_v34 = vadd.f32 %v695_v23, %v687_v2  ;;  %v696_v48 = vmul.f32 0.001953125, %v657_v38  ;;  %v629_v51 = vmul.f32 0.6931472, %v1061_v47  ;;  %v689_v57 = vadd.f32 %v685_v44, %v677_v43 }
  0x60   : > { %v658_v56 = vsub.f32 0.0, %v654_v50  ;;  %v643_v60 = vmul.f32 %v595_v49, %v583_v45  ;;  %v678_v63 = vmul.f32 0.0006510417, %v535_v53  ;;  %v686_v0 = vmul.f32 0.0006510417, %v563_v54 }
  0x61   : > { %703 = vst [vmem:[%s1594_s9] sm:$0xff] %v699_v34  ;;  %v700_v52 = vadd.f32 %v696_v48, %v688_v39  ;;  %v635_v58 = vsel %vm634_vm3, %v632_v46, %v629_v51 }
  0x62   : > { %v639_v59 = vmax.f32 %v635_v58, -100.0  ;;  %v697_v61 = vmul.f32 0.001953125, %v658_v56  ;;  %v690_v4 = vadd.f32 %v686_v0, %v678_v63 }
  0x63   : > { %704 = vst [vmem:[%s1594_s9 + $0x8] sm:$0xff] %v700_v52 }
  0x64   : > { %v651_v62 = vmul.f32 %v647_v55, %v639_v59  ;;  %v701_v1 = vadd.f32 %v697_v61, %v689_v57 }
  0x66   : > { %v655_v2 = vadd.f32 %v651_v62, %v643_v60  ;;  %705 = vst [vmem:[%s1594_s9 + $0x10] sm:$0xff] %v701_v1 }
  0x68   : > { %v659_v3 = vsub.f32 0.0, %v655_v2 }
  0x6a   : > { %v698_v5 = vmul.f32 0.001953125, %v659_v3 }
  0x6c   : > { %v702_v6 = vadd.f32 %v698_v5, %v690_v4 }
  0x6e   : > { %706 = vst [vmem:[%s1594_s9 + $0x18] sm:$0xff] %v702_v6 }
  0x6f   : > { %1269 = shalt.err (!%p1266_p13)
}
  0x70   : > { %971 = dma.vmem_to_hbm [thread:$0]  (%p1428_p9), %s722_s1, 512, %s724_s17, %s708_s24  }
  0x71 PF: > { %s1677_s0 = sld [smem:[#allocation24_spill]]  ;;  %s735_s29 = sand.u32 1, %s1316_s21  }
  0x72   : > { %p993_p0 = pnand %p920_p12, %p1435_p11  ;;  %s736_s13 = scalar_lea.sflag [#allocation7], %s735_s29 }
  0x74   : > { %p994_p1 = pneg %p993_p0 }
  0x76   : > { %1311 = dma.done.wait (%p994_p1), %s736_s13, 512  }
  0x77   : > { %1313 = vsyncadd (%p994_p1), %s736_s13, 4294966784  ;;  %s31_s26 = sadd.s32 1, %s1677_s0   ;;  %s1678_s16 = sld [smem:[#allocation22_spill]] }
  0x78   : > { %p28_p2 = scmp.ge.s32.totalorder %s31_s26, 4   ;;  %s1679_s23 = sld [smem:[#allocation26_spill]] }
  0x79   : > { %s1680_s24 = sld [smem:[#allocation23_spill]]  ;;  %s1682_s21 = smov %s1320_s22 }
  0x7a   : > { %s1681_s25 = sld [smem:[#allocation25_spill]]  ;;  %30 = sbr.rel (!%p28_p2) target bundleno = 17 (0x11), region = 158 }
  0x7d   : > { %s1683_s22 = smov %s1678_s16 }
  0x7f   :  { %742 = vsyncpa [#allocation6], 1 }
  0x80   :  { %744 = vsyncpa [#allocation6 + $0x1], 1 }
  0x81   :  { %745 = vsyncpa [#allocation9], 1 }
  0x82   :  { %747 = vsyncpa [#allocation9 + $0x1], 1 }
  0x83   :  { %748 = vsyncpa [#allocation12], 1 }
  0x84   :  { %750 = vsyncpa [#allocation12 + $0x1], 1 }
  0x85   :  { %751 = vsyncpa [#allocation15], 1 }
  0x86   :  { %753 = vsyncpa [#allocation15 + $0x1], 1 }
  0x87   :  { %754 = vsyncpa [#allocation7], 1 }
  0x88   :  { %756 = vsyncpa [#allocation7 + $0x1], 1 }

</bundles_post_ra>
